<compile_context>
chip_gen: v7x
topology: tpu7x:2x2x1
jax: 0.10.0
libtpu: 0.0.40
codegen_flags: <defaults>
</compile_context>

<pallas_src>
import jax
import jax.numpy as jnp
from jax.experimental import pallas as pl
from jax.experimental.pallas import tpu as pltpu


def _energy_mlp_kernel(x_ref, w1_ref, b1_ref, w2_ref, b2_ref, e_ref):
    # First layer on the MXU: bf16 operands, f32 accumulation.
    x = x_ref[...].astype(jnp.bfloat16)              # [TILE_B, D]
    w1 = w1_ref[...].astype(jnp.bfloat16)            # [D, H]
    h = jnp.dot(x, w1, preferred_element_type=jnp.float32)   # [TILE_B, H]
    h = jnp.maximum(h + b1_ref[...], 0.0)                     # bias + relu (VPU, f32)
    # Second layer kept in f32 (tiny: [TILE_B, H] @ [H, 1]).
    e = jnp.dot(h, w2_ref[...], preferred_element_type=jnp.float32)  # [TILE_B, 1]
    e_ref[...] = (e + b2_ref[0]).astype(e_ref.dtype)


def base_energy_model_forward(x, params, tile_b=None):
    """Pallas equivalent of BaseEnergyModel.forward(batch) -> model(batch).

    x: [B, D] float32 features.  Returns energies of shape [B] (float32).
    """
    w1, b1, w2, b2 = params
    B, D = x.shape
    H = w1.shape[1]

    # Tile the batch; big enough to amortize per-step overhead, small enough
    # that small batches do not over-pad.  Must be a multiple of 8 (sublanes).
    if tile_b is None:
        tile_b = min(512, ((B + 7) // 8) * 8)

    # Pad the batch to a multiple of the tile so every grid step is full.
    Bp = pl.cdiv(B, tile_b) * tile_b
    if Bp != B:
        x = jnp.pad(x, ((0, Bp - B), (0, 0)))
    x = x.astype(jnp.float32)

    # Wrapper-side layout plumbing for the (tiny, VMEM-resident) parameters.
    w1f = w1.astype(jnp.float32)                      # [D, H]
    b1r = b1.reshape(1, H).astype(jnp.float32)        # [1, H] (bcast over rows)
    w2f = w2.reshape(H, 1).astype(jnp.float32)        # [H, 1]
    b2s = jnp.asarray(b2, jnp.float32).reshape(1)     # scalar in SMEM

    grid = (Bp // tile_b,)

    cost = pl.CostEstimate(
        flops=2 * Bp * (D * H + H),
        transcendentals=0,
        bytes_accessed=(Bp * D * 4          # x (f32, single HBM read)
                        + D * H * 4         # W1
                        + H * 4 + H * 4 + 4  # b1, W2, b2
                        + Bp * 4),          # output (f32)
    )

    e = pl.pallas_call(
        _energy_mlp_kernel,
        out_shape=jax.ShapeDtypeStruct((Bp, 1), jnp.float32),
        grid=grid,
        in_specs=[
            # x tile streams over the batch (row) axis.
            pl.BlockSpec((tile_b, D), lambda i: (i, 0)),
            # Weights / biases: same block every step -> stay resident in VMEM.
            pl.BlockSpec((D, H), lambda i: (0, 0)),
            pl.BlockSpec((1, H), lambda i: (0, 0)),
            pl.BlockSpec((H, 1), lambda i: (0, 0)),
            # Scalar bias lives in SMEM (no padded VMEM tile / vreg wasted).
            pl.BlockSpec(memory_space=pltpu.MemorySpace.SMEM),
        ],
        out_specs=pl.BlockSpec((tile_b, 1), lambda i: (i, 0)),
        compiler_params=pltpu.CompilerParams(
            dimension_semantics=("parallel",),
            vmem_limit_bytes=32 * 1024 * 1024,
        ),
        cost_estimate=cost,
    )(x, w1f, b1r, w2f, b2s)

    return e[:B, 0]


def execution_step(x, y, params):
    """Mirrors BaseEnergyModel.execution_step: (loss, {'energy_mae': mae})."""
    energy = base_energy_model_forward(x, params).reshape(-1)
    # loss_fn is injected in the reference; use MSE (the repo's default).
    loss = jnp.mean((energy - y) ** 2)
    energy_mae = jnp.mean(jnp.abs(energy - y))
    return loss, {"energy_mae": energy_mae}


def init_params(key, in_dim, hidden_dim):
    k1, k2, k3, k4 = jax.random.split(key, 4)
    w1 = jax.random.normal(k1, (in_dim, hidden_dim), jnp.float32) * 0.1
    b1 = jax.random.normal(k2, (hidden_dim,), jnp.float32) * 0.1
    w2 = jax.random.normal(k3, (hidden_dim, 1), jnp.float32) * 0.1
    b2 = jax.random.normal(k4, (1,), jnp.float32) * 0.1
    return (w1, b1, w2, b2)


if __name__ == "__main__":
    B, D, H = 256, 32, 64
    key = jax.random.PRNGKey(0)
    kx, ky, kp = jax.random.split(key, 3)

    x = jax.random.normal(kx, (B, D), jnp.float32)    # batch features
    y = jax.random.normal(ky, (B,), jnp.float32)      # batch.y targets
    params = init_params(kp, D, H)

    # Forward pass (the Pallas kernel).
    energy = base_energy_model_forward(x, params).reshape(-1)
    energy = jax.block_until_ready(energy)

    # Reference with matching bf16 first-layer matmul / f32 accumulation.
    w1, b1, w2, b2 = params
    h_ref = jnp.maximum(
        jnp.dot(x.astype(jnp.bfloat16), w1.astype(jnp.bfloat16),
                preferred_element_type=jnp.float32) + b1.reshape(1, H),
        0.0,
    )
    ref = (h_ref @ w2 + b2).reshape(-1)
    assert jnp.allclose(energy, ref, atol=1e-2, rtol=1e-2), "mismatch vs reference"

    # execution_step semantics (loss + mae on top of the kernel output).
    loss, metrics = execution_step(x, y, params)
    jax.block_until_ready(loss)
    jax.block_until_ready(metrics["energy_mae"])

    print("KERNEL_OK")
</pallas_src>

<mosaic_0001>
module attributes {stable_mosaic.version = 11 : i64} {
  func.func @_energy_mlp_kernel(%arg0: i32, %arg1: memref<256x32xf32, #tpu.memory_space<vmem>>, %arg2: memref<32x64xf32, #tpu.memory_space<vmem>>, %arg3: memref<1x64xf32, #tpu.memory_space<vmem>>, %arg4: memref<64x1xf32, #tpu.memory_space<vmem>>, %arg5: memref<1xf32, #tpu.memory_space<smem>>, %arg6: memref<256x1xf32, #tpu.memory_space<vmem>>) attributes {dimension_semantics = [#tpu.dimension_semantics<parallel>], iteration_bounds = array<i64: 1>, scalar_prefetch = 0 : i64, scratch_operands = 0 : i64, tpu.core_type = #tpu.core_type<tc>, window_params = [{transform_indices = @transform_0, window_bounds = array<i64: 256, 32>}, {pipeline_mode = #tpu.pipeline_mode<synchronous>, transform_indices = @transform_1, window_bounds = array<i64: 32, 64>}, {pipeline_mode = #tpu.pipeline_mode<synchronous>, transform_indices = @transform_2, window_bounds = array<i64: 1, 64>}, {pipeline_mode = #tpu.pipeline_mode<synchronous>, transform_indices = @transform_3, window_bounds = array<i64: 64, 1>}, {transform_indices = @transform_4, window_bounds = array<i64: 1>}, {transform_indices = @transform_5, window_bounds = array<i64: 256, 1>}]} {
    %c0 = arith.constant 0 : index
    %c0_0 = arith.constant 0 : index
    %0 = vector.load %arg1[%c0, %c0_0] : memref<256x32xf32, #tpu.memory_space<vmem>>, vector<256x32xf32>
    %1 = arith.truncf %0 : vector<256x32xf32> to vector<256x32xbf16>
    %c0_1 = arith.constant 0 : index
    %c0_2 = arith.constant 0 : index
    %2 = vector.load %arg2[%c0_1, %c0_2] : memref<32x64xf32, #tpu.memory_space<vmem>>, vector<32x64xf32>
    %3 = arith.truncf %2 : vector<32x64xf32> to vector<32x64xbf16>
    %cst = arith.constant dense<0.000000e+00> : vector<256x64xf32>
    %4 = tpu.matmul %1, %3, %cst {dimension_numbers = #tpu.dot_dimension_numbers<[1], [0], [0], [1], [0, 0, 1, 1], [], []>} : vector<256x32xbf16>, vector<32x64xbf16>, vector<256x64xf32> -> vector<256x64xf32>
    %c0_3 = arith.constant 0 : index
    %c0_4 = arith.constant 0 : index
    %5 = vector.load %arg3[%c0_3, %c0_4] : memref<1x64xf32, #tpu.memory_space<vmem>>, vector<1x64xf32>
    %6 = vector.broadcast %5 : vector<1x64xf32> to vector<256x64xf32>
    %7 = arith.addf %4, %6 : vector<256x64xf32>
    %cst_5 = arith.constant 0.000000e+00 : f32
    %8 = vector.broadcast %cst_5 : f32 to vector<256x64xf32>
    %9 = arith.maximumf %7, %8 : vector<256x64xf32>
    %c0_6 = arith.constant 0 : index
    %c0_7 = arith.constant 0 : index
    %10 = vector.load %arg4[%c0_6, %c0_7] : memref<64x1xf32, #tpu.memory_space<vmem>>, vector<64x1xf32>
    %cst_8 = arith.constant dense<0.000000e+00> : vector<256x1xf32>
    %11 = tpu.matmul %9, %10, %cst_8 {dimension_numbers = #tpu.dot_dimension_numbers<[1], [0], [0], [1], [0, 0, 1, 1], [], []>} : vector<256x64xf32>, vector<64x1xf32>, vector<256x1xf32> -> vector<256x1xf32>
    %c0_9 = arith.constant 0 : index
    %12 = memref.load %arg5[%c0_9] : memref<1xf32, #tpu.memory_space<smem>>
    %13 = vector.broadcast %12 : f32 to vector<256x1xf32>
    %14 = arith.addf %11, %13 : vector<256x1xf32>
    %c0_10 = arith.constant 0 : index
    %c0_11 = arith.constant 0 : index
    %15 = vector.load %arg6[%c0_10, %c0_11] : memref<256x1xf32, #tpu.memory_space<vmem>>, vector<256x1xf32>
    tpu.vector_store %arg6[%c0_10, %c0_11], %14 {strides = array<i32>} : memref<256x1xf32, #tpu.memory_space<vmem>>, vector<256x1xf32>,
    return
  }
  func.func @transform_0(%arg0: i32) -> (i32, i32) {
    %c0_i32 = arith.constant 0 : i32
    %c0_i32_0 = arith.constant 0 : i32
    return %arg0, %c0_i32 : i32, i32
  }
  func.func @transform_1(%arg0: i32) -> (i32, i32) {
    %c0_i32 = arith.constant 0 : i32
    %c0_i32_0 = arith.constant 0 : i32
    %c0_i32_1 = arith.constant 0 : i32
    return %c0_i32, %c0_i32_0 : i32, i32
  }
  func.func @transform_2(%arg0: i32) -> (i32, i32) {
    %c0_i32 = arith.constant 0 : i32
    %c0_i32_0 = arith.constant 0 : i32
    %c0_i32_1 = arith.constant 0 : i32
    return %c0_i32, %c0_i32_0 : i32, i32
  }
  func.func @transform_3(%arg0: i32) -> (i32, i32) {
    %c0_i32 = arith.constant 0 : i32
    %c0_i32_0 = arith.constant 0 : i32
    %c0_i32_1 = arith.constant 0 : i32
    return %c0_i32, %c0_i32_0 : i32, i32
  }
  func.func @transform_4(%arg0: i32) -> i32 {
    %c0_i32 = arith.constant 0 : i32
    %c0_i32_0 = arith.constant 0 : i32
    return %c0_i32 : i32
  }
  func.func @transform_5(%arg0: i32) -> (i32, i32) {
    %c0_i32 = arith.constant 0 : i32
    %c0_i32_0 = arith.constant 0 : i32
    return %arg0, %c0_i32 : i32, i32
  }
}

</mosaic_0001>

<bundles_post_ra>
// kernel: tpu_custom_call.1
= control target key start
LH: loop header
LB: loop body
LE: loop exit
PB: predicated region body
PF: predicated region fallthrough
CT: control target
= control target key end

     0   :  { %vm83_vm0 = vcmask 261120   ;;  %vm335_vm1 = vcmask 523264   ;;  %vm657_vm2 = vcmask 7168   ;;  %s1337_s1 = inlined_call_operand.vmem [shape: f32[32,64], index: 1, kind: input, shape index: {}]   ;;  %s1338_s0 = inlined_call_operand.vmem [shape: f32[256,32], index: 0, kind: input, shape index: {}]   ;;  %s1339_s3 = inlined_call_operand.vmem [shape: f32[64,1], index: 3, kind: input, shape index: {}]   ;;  %s1340_s2 = inlined_call_operand.vmem [shape: f32[1,64], index: 2, kind: input, shape index: {}]   ;;  %s1341_s4 = inlined_call_operand.<no memory space> [shape: f32[1], index: 4, kind: input, shape index: {}]   ;;  %s1342_s5 = inlined_call_operand.vmem [shape: f32[256,1], index: 5, kind: output, shape index: {}]  }
   0x1   :  { %v70_v0 = vld [vmem:[%s1337_s1] sm:$0xff]  ;;  %v71_v1 = vld [vmem:[%s1337_s1 + $0x8] sm:$0xff]  ;;  %v72_v2 = vld [vmem:[%s1337_s1 + $0x10] sm:$0xff] }
   0x2   :  { %v74_v3 = vpack.c.bf16 %v71_v1, %v70_v0  ;;  %v73_v4 = vld [vmem:[%s1337_s1 + $0x18] sm:$0xff]  ;;  %v22_v5 = vld [vmem:[%s1338_s0] sm:$0xff]  ;;  %v23_v6 = vld [vmem:[%s1338_s0 + $0x8] sm:$0xff] }
   0x3   :  { %v75_v7 = vpack.c.bf16 %v73_v4, %v72_v2  ;;  %v54_v8 = vpack.c.bf16 %v23_v6, %v22_v5  ;;  %v24_v9 = vld [vmem:[%s1338_s0 + $0x10] sm:$0xff]  ;;  %v25_v10 = vld [vmem:[%s1338_s0 + $0x18] sm:$0xff]  ;;  %v26_v11 = vld [vmem:[%s1338_s0 + $0x20] sm:$0xff] }
   0x4   :  { %801 = vmatprep.subr.bf16.mxu0 %v74_v3  ;;  %v27_v12 = vld [vmem:[%s1338_s0 + $0x28] sm:$0xff]  ;;  %v55_v13 = vpack.c.bf16 %v25_v10, %v24_v9  ;;  %v28_v15 = vld [vmem:[%s1338_s0 + $0x30] sm:$0xff]  ;;  %v29_v16 = vld [vmem:[%s1338_s0 + $0x38] sm:$0xff] }
   0x5   :  { %802 = vmatpush3.bf16.msra.mxu0 %v74_v3  ;;  %805 = vmatprep.mubr.msk.bf16.mxu0 %vm83_vm0, %v54_v8  ;;  %v56_v14 = vpack.c.bf16 %v27_v12, %v26_v11  ;;  %v325_v17 = vld [vmem:[%s1339_s3] sm:$0xff]  ;;  %v326_v18 = vld [vmem:[%s1339_s3 + $0x8] sm:$0xff]  ;;  %v327_v19 = vld [vmem:[%s1339_s3 + $0x10] sm:$0xff]  ;;  %v57_v27 = vpack.c.bf16 %v29_v16, %v28_v15 }
   0x6   :  { %803 = vmatprep.subr.bf16.mxu0 %v75_v7  ;;  %v30_v20 = vld [vmem:[%s1338_s0 + $0x40] sm:$0xff]  ;;  %v31_v21 = vld [vmem:[%s1338_s0 + $0x48] sm:$0xff]  ;;  %v901_v22 = vpack.c.bf16 %v326_v18, %v325_v17  ;;  %v328_v23 = vld [vmem:[%s1339_s3 + $0x18] sm:$0xff] }
   0x7   :  { %v905_v24 = vpack.c.bf16 %v328_v23, %v327_v19  ;;  %v329_v25 = vld [vmem:[%s1339_s3 + $0x20] sm:$0xff]  ;;  %v330_v26 = vld [vmem:[%s1339_s3 + $0x28] sm:$0xff]  ;;  %v58_v28 = vpack.c.bf16 %v31_v21, %v30_v20  ;;  %v32_v30 = vld [vmem:[%s1338_s0 + $0x50] sm:$0xff] }
   0x8   :  { %917 = vmatprep.subr.bf16.mxu1 %v901_v22  ;;  %v909_v29 = vpack.c.bf16 %v330_v26, %v329_v25  ;;  %v33_v31 = vld [vmem:[%s1338_s0 + $0x58] sm:$0xff]  ;;  %v34_v32 = vld [vmem:[%s1338_s0 + $0x60] sm:$0xff]  ;;  %v35_v33 = vld [vmem:[%s1338_s0 + $0x68] sm:$0xff] }
   0x9   :  { %804 = vmatpush3.bf16.msra.mxu0 %v75_v7  ;;  %921 = vmatpush3.bf16.msra.mxu1 %v901_v22  ;;  %v59_v34 = vpack.c.bf16 %v33_v31, %v32_v30  ;;  %v60_v35 = vpack.c.bf16 %v35_v33, %v34_v32  ;;  %v36_v36 = vld [vmem:[%s1338_s0 + $0x70] sm:$0xff]  ;;  %v37_v37 = vld [vmem:[%s1338_s0 + $0x78] sm:$0xff]  ;;  %v38_v38 = vld [vmem:[%s1338_s0 + $0x80] sm:$0xff] }
   0xa   :  { %902 = vmatprep.subr.bf16.mxu0 %v901_v22  ;;  %918 = vmatprep.subr.bf16.mxu1 %v905_v24  ;;  %v39_v39 = vld [vmem:[%s1338_s0 + $0x88] sm:$0xff]  ;;  %v61_v40 = vpack.c.bf16 %v37_v37, %v36_v36  ;;  %v40_v42 = vld [vmem:[%s1338_s0 + $0x90] sm:$0xff]  ;;  %v41_v43 = vld [vmem:[%s1338_s0 + $0x98] sm:$0xff] }
   0xb   :  { %v62_v41 = vpack.c.bf16 %v39_v39, %v38_v38  ;;  %v42_v44 = vld [vmem:[%s1338_s0 + $0xa0] sm:$0xff]  ;;  %v43_v45 = vld [vmem:[%s1338_s0 + $0xa8] sm:$0xff]  ;;  %v63_v46 = vpack.c.bf16 %v41_v43, %v40_v42  ;;  %v44_v48 = vld [vmem:[%s1338_s0 + $0xb0] sm:$0xff] }
   0xc   :  { %806 = vmatmul.mubr.msk.bf16.vlgmr.msra.gmra.mrb[0].mxu0 %vm83_vm0, %v55_v13  ;;  %v64_v47 = vpack.c.bf16 %v43_v45, %v42_v44  ;;  %v45_v49 = vld [vmem:[%s1338_s0 + $0xb8] sm:$0xff]  ;;  %v46_v50 = vld [vmem:[%s1338_s0 + $0xc0] sm:$0xff]  ;;  %v47_v51 = vld [vmem:[%s1338_s0 + $0xc8] sm:$0xff] }
   0xd   :  { %809 = vmatprep.mubr.msk.bf16.mxu0 %vm83_vm0, %v56_v14  ;;  %904 = vmatpush3.bf16.msra.mxu0 %v901_v22  ;;  %v65_v52 = vpack.c.bf16 %v45_v49, %v44_v48  ;;  %v66_v53 = vpack.c.bf16 %v47_v51, %v46_v50  ;;  %v48_v54 = vld [vmem:[%s1338_s0 + $0xd0] sm:$0xff]  ;;  %v49_v55 = vld [vmem:[%s1338_s0 + $0xd8] sm:$0xff]  ;;  %v50_v56 = vld [vmem:[%s1338_s0 + $0xe0] sm:$0xff] }
   0xe   :  { %906 = vmatprep.subr.bf16.mxu0 %v905_v24  ;;  %922 = vmatpush3.bf16.msra.mxu1 %v905_v24  ;;  %v51_v57 = vld [vmem:[%s1338_s0 + $0xe8] sm:$0xff]  ;;  %v67_v58 = vpack.c.bf16 %v49_v55, %v48_v54  ;;  %v52_v60 = vld [vmem:[%s1338_s0 + $0xf0] sm:$0xff]  ;;  %v53_v61 = vld [vmem:[%s1338_s0 + $0xf8] sm:$0xff] }
   0xf   :  { %919 = vmatprep.subr.bf16.mxu1 %v909_v29  ;;  %v68_v59 = vpack.c.bf16 %v51_v57, %v50_v56  ;;  %v69_v62 = vpack.c.bf16 %v53_v61, %v52_v60  ;;  %v331_v63 = vld [vmem:[%s1339_s3 + $0x30] sm:$0xff]  ;;  %v332_v0 = vld [vmem:[%s1339_s3 + $0x38] sm:$0xff]  ;;  %v1106_v2 = vld [vmem:[%s1340_s2] ss:$0 sm:$0xff] }
  0x10   :  { %v913_v1 = vpack.c.bf16 %v332_v0, %v331_v63 }
  0x11   :  { %908 = vmatpush3.bf16.msra.mxu0 %v905_v24 }
  0x12   :  { %910 = vmatprep.subr.bf16.mxu0 %v909_v29  ;;  %923 = vmatpush3.bf16.msra.mxu1 %v909_v29 }
  0x13   :  { %920 = vmatprep.subr.bf16.mxu1 %v913_v1 }
  0x14   :  { %810 = vmatmul.mubr.msk.bf16.gmra.mrb[4].mxu0 %vm83_vm0, %v57_v27 }
  0x15   :  { %813 = vmatprep.mubr.msk.bf16.mxu0 %vm83_vm0, %v58_v28  ;;  %912 = vmatpush3.bf16.msra.mxu0 %v909_v29 }
  0x16   :  { %914 = vmatprep.subr.bf16.mxu0 %v913_v1  ;;  %924 = vmatpush3.bf16.msra.mxu1 %v913_v1 }
  0x19   :  { %916 = vmatpush3.bf16.msra.mxu0 %v913_v1 }
  0x1c   :  { %814 = vmatmul.mubr.msk.bf16.gmra.mrb[8].mxu0 %vm83_vm0, %v59_v34 }
  0x1d   :  { %817 = vmatprep.mubr.msk.bf16.mxu0 %vm83_vm0, %v60_v35 }
  0x24   :  { %818 = vmatmul.mubr.msk.bf16.gmra.mrb[12].mxu0 %vm83_vm0, %v61_v40 }
  0x25   :  { %821 = vmatprep.mubr.msk.bf16.mxu0 %vm83_vm0, %v62_v41 }
  0x2c   :  { %822 = vmatmul.mubr.msk.bf16.gmra.mrb[16].mxu0 %vm83_vm0, %v63_v46 }
  0x2d   :  { %825 = vmatprep.mubr.msk.bf16.mxu0 %vm83_vm0, %v64_v47 }
  0x34   :  { %826 = vmatmul.mubr.msk.bf16.gmra.mrb[20].mxu0 %vm83_vm0, %v65_v52 }
  0x35   :  { %829 = vmatprep.mubr.msk.bf16.mxu0 %vm83_vm0, %v66_v53 }
  0x3c   :  { %830 = vmatmul.mubr.msk.bf16.gmra.mrb[24].mxu0 %vm83_vm0, %v67_v58 }
  0x3d   :  { %833 = vmatprep.mubr.msk.bf16.mxu0 %vm83_vm0, %v68_v59 }
  0x44   :  { %834 = vmatmul.mubr.msk.bf16.gmra.mrb[28].mxu0 %vm83_vm0, %v69_v62 }
  0xdf   :  { %v807_v3 = vpop.f32.mrb[0].mxu0 }
  0xe0   :  { %v175_v4 = vadd.f32 %v807_v3, %v1106_v2  ;;  %v166_v5 = vpop.f32.mrb[1].mxu0 }
  0xe1   :  { %v167_v6 = vadd.f32 %v1106_v2, %v166_v5  ;;  %v808_v7 = vpop.f32.mrb[2].mxu0 }
  0xe2   :  { %v295_v8 = vmax.f32 %v175_v4, 0.0  ;;  %v178_v9 = vadd.f32 %v808_v7, %v1106_v2  ;;  %v169_v10 = vpop.f32.mrb[3].mxu0 }
  0xe3   :  { %v293_v11 = vmax.f32 %v167_v6, 0.0  ;;  %v170_v12 = vadd.f32 %v1106_v2, %v169_v10 }
  0xe4   :  { %v296_v13 = vmax.f32 %v178_v9, 0.0  ;;  %856 = vmatprep.mubr.msk.f32.mxu1 %vm335_vm1, %v295_v8 }
  0xe5   :  { %v294_v14 = vmax.f32 %v170_v12, 0.0  ;;  %853 = vmatprep.mubr.msk.f32.mxu0 %vm335_vm1, %v293_v11 }
  0xe6   :  { %857 = vmatmul.mubr.msk.f32.vlgmr.msra.gmra.mrb[0].mxu1 %vm335_vm1, %v296_v13 }
  0xe7   :  { %v811_v15 = vpop.f32.mrb[4].mxu0  ;;  %854 = vmatmul.mubr.msk.f32.vlgmr.msra.gmra.mrb[32].mxu0 %vm335_vm1, %v294_v14 }
  0xe8   :  { %v182_v16 = vpop.f32.mrb[5].mxu0  ;;  %v191_v19 = vadd.f32 %v811_v15, %v1106_v2 }
  0xe9   :  { %v183_v17 = vadd.f32 %v1106_v2, %v182_v16  ;;  %v812_v18 = vpop.f32.mrb[6].mxu0 }
  0xea   :  { %v185_v20 = vpop.f32.mrb[7].mxu0  ;;  %v194_v23 = vadd.f32 %v812_v18, %v1106_v2  ;;  %v299_v25 = vmax.f32 %v191_v19, 0.0 }
  0xeb   :  { %v297_v21 = vmax.f32 %v183_v17, 0.0  ;;  %v186_v22 = vadd.f32 %v1106_v2, %v185_v20 }
  0xec   :  { %v300_v28 = vmax.f32 %v194_v23, 0.0 }
  0xed   :  { %v298_v24 = vmax.f32 %v186_v22, 0.0  ;;  %859 = vmatprep.mubr.msk.f32.mxu1 %vm335_vm1, %v297_v21 }
  0xef   :  { %v815_v26 = vpop.f32.mrb[8].mxu0  ;;  %860 = vmatmul.mubr.msk.f32.gmra.mrb[2].mxu1 %vm335_vm1, %v298_v24 }
  0xf0   :  { %v198_v27 = vpop.f32.mrb[9].mxu0  ;;  %862 = vmatprep.mubr.msk.f32.mxu1 %vm335_vm1, %v299_v25  ;;  %v207_v31 = vadd.f32 %v815_v26, %v1106_v2 }
  0xf1   :  { %v199_v29 = vadd.f32 %v1106_v2, %v198_v27  ;;  %v816_v30 = vpop.f32.mrb[10].mxu0 }
  0xf2   :  { %v201_v32 = vpop.f32.mrb[11].mxu0  ;;  %v210_v35 = vadd.f32 %v816_v30, %v1106_v2  ;;  %v303_v37 = vmax.f32 %v207_v31, 0.0 }
  0xf3   :  { %v301_v33 = vmax.f32 %v199_v29, 0.0  ;;  %v202_v34 = vadd.f32 %v1106_v2, %v201_v32  ;;  %863 = vmatmul.mubr.msk.f32.gmra.mrb[4].mxu1 %vm335_vm1, %v300_v28 }
  0xf4   :  { %v304_v40 = vmax.f32 %v210_v35, 0.0 }
  0xf5   :  { %v302_v36 = vmax.f32 %v202_v34, 0.0  ;;  %865 = vmatprep.mubr.msk.f32.mxu1 %vm335_vm1, %v301_v33 }
  0xf7   :  { %v819_v38 = vpop.f32.mrb[12].mxu0  ;;  %866 = vmatmul.mubr.msk.f32.gmra.mrb[6].mxu1 %vm335_vm1, %v302_v36  ;;  %v1175_v36 = vstv %s1341_s4 }
  0xf8   :  { %v214_v39 = vpop.f32.mrb[13].mxu0  ;;  %868 = vmatprep.mubr.msk.f32.mxu1 %vm335_vm1, %v303_v37  ;;  %v223_v43 = vadd.f32 %v819_v38, %v1106_v2 }
  0xf9   :  { %v215_v41 = vadd.f32 %v1106_v2, %v214_v39  ;;  %v820_v42 = vpop.f32.mrb[14].mxu0 }
  0xfa   :  { %v217_v44 = vpop.f32.mrb[15].mxu0  ;;  %v226_v47 = vadd.f32 %v820_v42, %v1106_v2  ;;  %v307_v49 = vmax.f32 %v223_v43, 0.0 }
  0xfb   :  { %v305_v45 = vmax.f32 %v215_v41, 0.0  ;;  %v218_v46 = vadd.f32 %v1106_v2, %v217_v44  ;;  %869 = vmatmul.mubr.msk.f32.gmra.mrb[8].mxu1 %vm335_vm1, %v304_v40 }
  0xfc   :  { %v308_v52 = vmax.f32 %v226_v47, 0.0 }
  0xfd   :  { %v306_v48 = vmax.f32 %v218_v46, 0.0  ;;  %871 = vmatprep.mubr.msk.f32.mxu1 %vm335_vm1, %v305_v45 }
  0xff   :  { %v823_v50 = vpop.f32.mrb[16].mxu0  ;;  %872 = vmatmul.mubr.msk.f32.gmra.mrb[10].mxu1 %vm335_vm1, %v306_v48 }
 0x100   :  { %v230_v51 = vpop.f32.mrb[17].mxu0  ;;  %874 = vmatprep.mubr.msk.f32.mxu1 %vm335_vm1, %v307_v49  ;;  %v239_v55 = vadd.f32 %v823_v50, %v1106_v2 }
 0x101   :  { %v231_v53 = vadd.f32 %v1106_v2, %v230_v51  ;;  %v824_v54 = vpop.f32.mrb[18].mxu0 }
 0x102   :  { %v233_v56 = vpop.f32.mrb[19].mxu0  ;;  %v242_v59 = vadd.f32 %v824_v54, %v1106_v2  ;;  %v311_v61 = vmax.f32 %v239_v55, 0.0 }
 0x103   :  { %v309_v57 = vmax.f32 %v231_v53, 0.0  ;;  %v234_v58 = vadd.f32 %v1106_v2, %v233_v56  ;;  %875 = vmatmul.mubr.msk.f32.gmra.mrb[12].mxu1 %vm335_vm1, %v308_v52 }
 0x104   :  { %v312_v0 = vmax.f32 %v242_v59, 0.0 }
 0x105   :  { %v310_v60 = vmax.f32 %v234_v58, 0.0  ;;  %877 = vmatprep.mubr.msk.f32.mxu1 %vm335_vm1, %v309_v57 }
 0x107   :  { %v827_v62 = vpop.f32.mrb[20].mxu0  ;;  %878 = vmatmul.mubr.msk.f32.gmra.mrb[14].mxu1 %vm335_vm1, %v310_v60 }
 0x108   :  { %v246_v63 = vpop.f32.mrb[21].mxu0  ;;  %880 = vmatprep.mubr.msk.f32.mxu1 %vm335_vm1, %v311_v61  ;;  %v255_v4 = vadd.f32 %v827_v62, %v1106_v2 }
 0x109   :  { %v247_v1 = vadd.f32 %v1106_v2, %v246_v63  ;;  %v828_v3 = vpop.f32.mrb[22].mxu0 }
 0x10a   :  { %v249_v5 = vpop.f32.mrb[23].mxu0  ;;  %v258_v8 = vadd.f32 %v828_v3, %v1106_v2  ;;  %v315_v10 = vmax.f32 %v255_v4, 0.0 }
 0x10b   :  { %v313_v6 = vmax.f32 %v247_v1, 0.0  ;;  %v250_v7 = vadd.f32 %v1106_v2, %v249_v5  ;;  %881 = vmatmul.mubr.msk.f32.gmra.mrb[16].mxu1 %vm335_vm1, %v312_v0 }
 0x10c   :  { %v316_v13 = vmax.f32 %v258_v8, 0.0 }
 0x10d   :  { %v314_v9 = vmax.f32 %v250_v7, 0.0  ;;  %883 = vmatprep.mubr.msk.f32.mxu1 %vm335_vm1, %v313_v6 }
 0x10f   :  { %v831_v11 = vpop.f32.mrb[24].mxu0  ;;  %884 = vmatmul.mubr.msk.f32.gmra.mrb[18].mxu1 %vm335_vm1, %v314_v9 }
 0x110   :  { %v262_v12 = vpop.f32.mrb[25].mxu0  ;;  %886 = vmatprep.mubr.msk.f32.mxu1 %vm335_vm1, %v315_v10  ;;  %v271_v16 = vadd.f32 %v831_v11, %v1106_v2 }
 0x111   :  { %v263_v14 = vadd.f32 %v1106_v2, %v262_v12  ;;  %v832_v15 = vpop.f32.mrb[26].mxu0 }
 0x112   :  { %v265_v17 = vpop.f32.mrb[27].mxu0  ;;  %v274_v20 = vadd.f32 %v832_v15, %v1106_v2  ;;  %v319_v22 = vmax.f32 %v271_v16, 0.0 }
 0x113   :  { %v317_v18 = vmax.f32 %v263_v14, 0.0  ;;  %v266_v19 = vadd.f32 %v1106_v2, %v265_v17  ;;  %887 = vmatmul.mubr.msk.f32.gmra.mrb[20].mxu1 %vm335_vm1, %v316_v13 }
 0x114   :  { %v320_v25 = vmax.f32 %v274_v20, 0.0 }
 0x115   :  { %v318_v21 = vmax.f32 %v266_v19, 0.0  ;;  %889 = vmatprep.mubr.msk.f32.mxu1 %vm335_vm1, %v317_v18 }
 0x117   :  { %v835_v23 = vpop.f32.mrb[28].mxu0  ;;  %890 = vmatmul.mubr.msk.f32.gmra.mrb[22].mxu1 %vm335_vm1, %v318_v21 }
 0x118   :  { %v278_v24 = vpop.f32.mrb[29].mxu0  ;;  %892 = vmatprep.mubr.msk.f32.mxu1 %vm335_vm1, %v319_v22  ;;  %v287_v28 = vadd.f32 %v835_v23, %v1106_v2 }
 0x119   :  { %v279_v26 = vadd.f32 %v1106_v2, %v278_v24  ;;  %v836_v27 = vpop.f32.mrb[30].mxu0 }
 0x11a   :  { %v281_v29 = vpop.f32.mrb[31].mxu0  ;;  %v290_v32 = vadd.f32 %v836_v27, %v1106_v2  ;;  %v323_v34 = vmax.f32 %v287_v28, 0.0 }
 0x11b   :  { %v321_v30 = vmax.f32 %v279_v26, 0.0  ;;  %v282_v31 = vadd.f32 %v1106_v2, %v281_v29  ;;  %893 = vmatmul.mubr.msk.f32.gmra.mrb[24].mxu1 %vm335_vm1, %v320_v25 }
 0x11c   :  { %v324_v35 = vmax.f32 %v290_v32, 0.0 }
 0x11d   :  { %v322_v33 = vmax.f32 %v282_v31, 0.0  ;;  %895 = vmatprep.mubr.msk.f32.mxu1 %vm335_vm1, %v321_v30 }
 0x11f   :  { %896 = vmatmul.mubr.msk.f32.gmra.mrb[26].mxu1 %vm335_vm1, %v322_v33 }
 0x120   :  { %898 = vmatprep.mubr.msk.f32.mxu1 %vm335_vm1, %v323_v34 }
 0x123   :  { %899 = vmatmul.mubr.msk.f32.gmra.mrb[28].mxu1 %vm335_vm1, %v324_v35 }
 0x1b9   :  { %v858_v37 = vpop.f32.mrb[0].mxu1 }
 0x1ba   :  { %v514_v2 = vadd.f32 %v858_v37, %v1175_v36  ;;  %v855_v38 = vpop.f32.mrb[32].mxu0  ;;  %v508_v39 = vpop.f32.mrb[1].mxu1 }
 0x1bb   :  { %v504_v40 = vadd.f32 %v855_v38, %v1175_v36  ;;  %v509_v41 = vadd.f32 %v508_v39, %v1175_v36  ;;  %v498_v42 = vpop.f32.mrb[33].mxu0 }
 0x1bc   :  { %661 = vst.msk [vmem:[%s1342_s5 + $0x18] sm:$0xff] %vm657_vm2, %v514_v2  ;;  %v499_v43 = vadd.f32 %v498_v42, %v1175_v36 }
 0x1bd   :  { %659 = vst.msk [vmem:[%s1342_s5 + $0x8] sm:$0xff] %vm657_vm2, %v504_v40  ;;  %660 = vst.msk [vmem:[%s1342_s5 + $0x10] sm:$0xff] %vm657_vm2, %v509_v41 }
 0x1be   :  { %658 = vst.msk [vmem:[%s1342_s5] sm:$0xff] %vm657_vm2, %v499_v43 }
 0x1c2   :  { %v861_v44 = vpop.f32.mrb[2].mxu1 }
 0x1c3   :  { %v524_v45 = vadd.f32 %v861_v44, %v1175_v36  ;;  %v518_v46 = vpop.f32.mrb[3].mxu1 }
 0x1c4   :  { %v519_v47 = vadd.f32 %v518_v46, %v1175_v36 }
 0x1c5   :  { %663 = vst.msk [vmem:[%s1342_s5 + $0x28] sm:$0xff] %vm657_vm2, %v524_v45 }
 0x1c6   :  { %662 = vst.msk [vmem:[%s1342_s5 + $0x20] sm:$0xff] %vm657_vm2, %v519_v47  ;;  %v864_v48 = vpop.f32.mrb[4].mxu1 }
 0x1c7   :  { %v534_v49 = vadd.f32 %v864_v48, %v1175_v36  ;;  %v528_v50 = vpop.f32.mrb[5].mxu1 }
 0x1c8   :  { %v529_v51 = vadd.f32 %v528_v50, %v1175_v36 }
 0x1c9   :  { %665 = vst.msk [vmem:[%s1342_s5 + $0x38] sm:$0xff] %vm657_vm2, %v534_v49 }
 0x1ca   :  { %664 = vst.msk [vmem:[%s1342_s5 + $0x30] sm:$0xff] %vm657_vm2, %v529_v51  ;;  %v867_v52 = vpop.f32.mrb[6].mxu1 }
 0x1cb   :  { %v544_v53 = vadd.f32 %v867_v52, %v1175_v36  ;;  %v538_v54 = vpop.f32.mrb[7].mxu1 }
 0x1cc   :  { %v539_v55 = vadd.f32 %v538_v54, %v1175_v36 }
 0x1cd   :  { %667 = vst.msk [vmem:[%s1342_s5 + $0x48] sm:$0xff] %vm657_vm2, %v544_v53 }
 0x1ce   :  { %666 = vst.msk [vmem:[%s1342_s5 + $0x40] sm:$0xff] %vm657_vm2, %v539_v55  ;;  %v870_v56 = vpop.f32.mrb[8].mxu1 }
 0x1cf   :  { %v554_v57 = vadd.f32 %v870_v56, %v1175_v36  ;;  %v548_v58 = vpop.f32.mrb[9].mxu1 }
 0x1d0   :  { %v549_v59 = vadd.f32 %v548_v58, %v1175_v36 }
 0x1d1   :  { %669 = vst.msk [vmem:[%s1342_s5 + $0x58] sm:$0xff] %vm657_vm2, %v554_v57 }
 0x1d2   :  { %668 = vst.msk [vmem:[%s1342_s5 + $0x50] sm:$0xff] %vm657_vm2, %v549_v59  ;;  %v873_v60 = vpop.f32.mrb[10].mxu1 }
 0x1d3   :  { %v564_v61 = vadd.f32 %v873_v60, %v1175_v36  ;;  %v558_v62 = vpop.f32.mrb[11].mxu1 }
 0x1d4   :  { %v559_v63 = vadd.f32 %v558_v62, %v1175_v36 }
 0x1d5   :  { %671 = vst.msk [vmem:[%s1342_s5 + $0x68] sm:$0xff] %vm657_vm2, %v564_v61 }
 0x1d6   :  { %670 = vst.msk [vmem:[%s1342_s5 + $0x60] sm:$0xff] %vm657_vm2, %v559_v63  ;;  %v876_v0 = vpop.f32.mrb[12].mxu1 }
 0x1d7   :  { %v574_v1 = vadd.f32 %v876_v0, %v1175_v36  ;;  %v568_v3 = vpop.f32.mrb[13].mxu1 }
 0x1d8   :  { %v569_v4 = vadd.f32 %v568_v3, %v1175_v36 }
 0x1d9   :  { %673 = vst.msk [vmem:[%s1342_s5 + $0x78] sm:$0xff] %vm657_vm2, %v574_v1 }
 0x1da   :  { %672 = vst.msk [vmem:[%s1342_s5 + $0x70] sm:$0xff] %vm657_vm2, %v569_v4  ;;  %v879_v5 = vpop.f32.mrb[14].mxu1 }
 0x1db   :  { %v584_v6 = vadd.f32 %v879_v5, %v1175_v36  ;;  %v578_v7 = vpop.f32.mrb[15].mxu1 }
 0x1dc   :  { %v579_v8 = vadd.f32 %v578_v7, %v1175_v36 }
 0x1dd   :  { %675 = vst.msk [vmem:[%s1342_s5 + $0x88] sm:$0xff] %vm657_vm2, %v584_v6 }
 0x1de   :  { %674 = vst.msk [vmem:[%s1342_s5 + $0x80] sm:$0xff] %vm657_vm2, %v579_v8  ;;  %v882_v9 = vpop.f32.mrb[16].mxu1 }
 0x1df   :  { %v594_v10 = vadd.f32 %v882_v9, %v1175_v36  ;;  %v588_v11 = vpop.f32.mrb[17].mxu1 }
 0x1e0   :  { %v589_v12 = vadd.f32 %v588_v11, %v1175_v36 }
 0x1e1   :  { %677 = vst.msk [vmem:[%s1342_s5 + $0x98] sm:$0xff] %vm657_vm2, %v594_v10 }
 0x1e2   :  { %676 = vst.msk [vmem:[%s1342_s5 + $0x90] sm:$0xff] %vm657_vm2, %v589_v12  ;;  %v885_v13 = vpop.f32.mrb[18].mxu1 }
 0x1e3   :  { %v604_v14 = vadd.f32 %v885_v13, %v1175_v36  ;;  %v598_v15 = vpop.f32.mrb[19].mxu1 }
 0x1e4   :  { %v599_v16 = vadd.f32 %v598_v15, %v1175_v36 }
 0x1e5   :  { %679 = vst.msk [vmem:[%s1342_s5 + $0xa8] sm:$0xff] %vm657_vm2, %v604_v14 }
 0x1e6   :  { %678 = vst.msk [vmem:[%s1342_s5 + $0xa0] sm:$0xff] %vm657_vm2, %v599_v16  ;;  %v888_v17 = vpop.f32.mrb[20].mxu1 }
 0x1e7   :  { %v614_v18 = vadd.f32 %v888_v17, %v1175_v36  ;;  %v608_v19 = vpop.f32.mrb[21].mxu1 }
 0x1e8   :  { %v609_v20 = vadd.f32 %v608_v19, %v1175_v36 }
 0x1e9   :  { %681 = vst.msk [vmem:[%s1342_s5 + $0xb8] sm:$0xff] %vm657_vm2, %v614_v18 }
 0x1ea   :  { %680 = vst.msk [vmem:[%s1342_s5 + $0xb0] sm:$0xff] %vm657_vm2, %v609_v20  ;;  %v891_v21 = vpop.f32.mrb[22].mxu1 }
 0x1eb   :  { %v624_v22 = vadd.f32 %v891_v21, %v1175_v36  ;;  %v618_v23 = vpop.f32.mrb[23].mxu1 }
 0x1ec   :  { %v619_v24 = vadd.f32 %v618_v23, %v1175_v36 }
 0x1ed   :  { %683 = vst.msk [vmem:[%s1342_s5 + $0xc8] sm:$0xff] %vm657_vm2, %v624_v22 }
 0x1ee   :  { %682 = vst.msk [vmem:[%s1342_s5 + $0xc0] sm:$0xff] %vm657_vm2, %v619_v24  ;;  %v894_v25 = vpop.f32.mrb[24].mxu1 }
 0x1ef   :  { %v634_v26 = vadd.f32 %v894_v25, %v1175_v36  ;;  %v628_v27 = vpop.f32.mrb[25].mxu1 }
 0x1f0   :  { %v629_v28 = vadd.f32 %v628_v27, %v1175_v36 }
 0x1f1   :  { %685 = vst.msk [vmem:[%s1342_s5 + $0xd8] sm:$0xff] %vm657_vm2, %v634_v26 }
 0x1f2   :  { %684 = vst.msk [vmem:[%s1342_s5 + $0xd0] sm:$0xff] %vm657_vm2, %v629_v28  ;;  %v897_v29 = vpop.f32.mrb[26].mxu1 }
 0x1f3   :  { %v644_v30 = vadd.f32 %v897_v29, %v1175_v36  ;;  %v638_v31 = vpop.f32.mrb[27].mxu1 }
 0x1f4   :  { %v639_v32 = vadd.f32 %v638_v31, %v1175_v36 }
 0x1f5   :  { %687 = vst.msk [vmem:[%s1342_s5 + $0xe8] sm:$0xff] %vm657_vm2, %v644_v30 }
 0x1f6   :  { %686 = vst.msk [vmem:[%s1342_s5 + $0xe0] sm:$0xff] %vm657_vm2, %v639_v32  ;;  %v900_v33 = vpop.f32.mrb[28].mxu1 }
 0x1f7   :  { %v654_v34 = vadd.f32 %v900_v33, %v1175_v36  ;;  %v648_v35 = vpop.f32.mrb[29].mxu1 }
 0x1f8   :  { %v649_v37 = vadd.f32 %v648_v35, %v1175_v36 }
 0x1f9   :  { %689 = vst.msk [vmem:[%s1342_s5 + $0xf8] sm:$0xff] %vm657_vm2, %v654_v34 }
 0x1fa   :  { %688 = vst.msk [vmem:[%s1342_s5 + $0xf0] sm:$0xff] %vm657_vm2, %v649_v37 }

</bundles_post_ra>
